<compile_context>
chip_gen: v7x
topology: tpu7x:2x2x1
jax: 0.10.0
libtpu: 0.0.40
codegen_flags: <defaults>
</compile_context>

<pallas_src>
import jax
import jax.numpy as jnp
from jax.experimental import pallas as pl
from jax.experimental.pallas import tpu as pltpu

NUM_CLASSES = 10

_LANES = 128      # vreg lane width
_SUBLANES = 8     # vreg sublane depth


def _randint_kernel(seed_ref, o_ref):
    """Fill o_ref (rows, 128) with uniform class ids in [0, NUM_CLASSES)."""
    rows, lanes = o_ref.shape

    # Per-element counter (flat index), all in 32-bit integer VPU ops.
    row = jax.lax.broadcasted_iota(jnp.int32, (rows, lanes), 0)
    col = jax.lax.broadcasted_iota(jnp.int32, (rows, lanes), 1)
    idx = (row * lanes + col).astype(jnp.uint32)

    # Fold in the seed (golden-ratio increment), then splitmix32-style mixing
    # to get well-distributed 32 random bits per element.
    seed = seed_ref[0].astype(jnp.uint32)
    x = idx + seed * jnp.uint32(0x9E3779B9)
    x = (x ^ (x >> 16)) * jnp.uint32(0x7FEB352D)
    x = (x ^ (x >> 15)) * jnp.uint32(0x846CA68B)
    x = x ^ (x >> 16)

    # Multiply-high range reduction to [0, NUM_CLASSES).  No vector int
    # div/mod on TPU; the tiny uniformity bias (< 2^-12) is negligible.
    cls = ((x >> 16) * jnp.uint32(NUM_CLASSES)) >> 16
    o_ref[...] = cls.astype(jnp.int32)


def random_classifier_forward(x, seed=0):
    """Pallas equivalent of random_classifier.forward(x, device).

    Args:
      x: array of shape [B, ...] (contents unused, only B is read).
      seed: int seed; vary per call for fresh draws (same seed -> same ids).

    Returns:
      int32 array of shape [B] with values uniform in [0, NUM_CLASSES).
      (PyTorch would give int64; JAX default integer width is int32.)
    """
    batch = x.shape[0]

    # Pad the batch up to a whole number of (8, 128) vregs and emit one
    # lane-dense block.  int32 * padded fits easily in VMEM for any realistic
    # batch (1M elements = 4 MiB).
    padded = pl.cdiv(batch, _SUBLANES * _LANES) * _SUBLANES * _LANES
    rows = padded // _LANES
    # TODO(synk): for batches whose int32 padding would exceed VMEM (~tens of
    # millions of elements), switch to a ("parallel",) grid over row tiles.

    seed_arr = jnp.asarray([seed], dtype=jnp.int32)

    tile = pl.pallas_call(
        _randint_kernel,
        out_shape=jax.ShapeDtypeStruct((rows, _LANES), jnp.int32),
        in_specs=[pl.BlockSpec(memory_space=pltpu.MemorySpace.SMEM)],
        out_specs=pl.BlockSpec(memory_space=pltpu.MemorySpace.VMEM),
    )(seed_arr)

    # Glue: take the first `batch` random class ids (reshape of a (rows,128)
    # row-major block is layout-trivial; the slice is the only extra op).
    return tile.reshape(-1)[:batch]


def init_unused_fc_params(key, num_classes=NUM_CLASSES):
    """Deterministic init of the module's fc = nn.Linear(3, num_classes).

    These parameters are never used in forward(); created only to mirror
    __init__'s parameter shapes.
    """
    k_w, k_b = jax.random.split(key)
    bound = 1.0 / jnp.sqrt(3.0)  # PyTorch default: U(-1/sqrt(fan_in), +1/sqrt(fan_in))
    w = jax.random.uniform(k_w, (num_classes, 3), jnp.float32, -bound, bound)
    b = jax.random.uniform(k_b, (num_classes,), jnp.float32, -bound, bound)
    return {"fc.weight": w, "fc.bias": b}
    # TODO(synk): torch.save of the state_dict has no kernel equivalent; skipped.


if __name__ == "__main__":
    key = jax.random.PRNGKey(0)
    k_x, k_params = jax.random.split(key)

    # Deterministic (unused) parameters, matching nn.Linear(3, NUM_CLASSES).
    params = init_unused_fc_params(k_params)

    # Small NCHW input consistent with an image-classifier forward signature.
    x = jax.random.normal(k_x, (2, 4, 16, 16), dtype=jnp.float32)

    out = random_classifier_forward(x, seed=0)
    out = jax.block_until_ready(out)

    assert out.shape == (x.shape[0],)
    assert out.dtype == jnp.int32
    assert bool(jnp.all((out >= 0) & (out < NUM_CLASSES)))

    # Different seed -> (statistically) different draws, same shape/range.
    out2 = jax.block_until_ready(random_classifier_forward(x, seed=123))
    assert out2.shape == (x.shape[0],)
    assert bool(jnp.all((out2 >= 0) & (out2 < NUM_CLASSES)))

    print("KERNEL_OK")
</pallas_src>

<mosaic_0001>
module attributes {stable_mosaic.version = 11 : i64} {
  func.func @_randint_kernel(%arg0: memref<1xi32, #tpu.memory_space<smem>>, %arg1: memref<8x128xi32, #tpu.memory_space<vmem>>) attributes {dimension_semantics = [], scalar_prefetch = 0 : i64, scratch_operands = 0 : i64, tpu.core_type = #tpu.core_type<tc>} {
    %0 = tpu.iota {dimensions = array<i32: 0>} : vector<8x128xi32>
    %1 = tpu.iota {dimensions = array<i32: 1>} : vector<8x128xi32>
    %c128_i32 = arith.constant 128 : i32
    %2 = vector.broadcast %c128_i32 : i32 to vector<8x128xi32>
    %3 = arith.muli %0, %2 : vector<8x128xi32>
    %4 = arith.addi %3, %1 : vector<8x128xi32>
    %c0 = arith.constant 0 : index
    %5 = memref.load %arg0[%c0] : memref<1xi32, #tpu.memory_space<smem>>
    %c-1640531527_i32 = arith.constant -1640531527 : i32
    %6 = arith.muli %5, %c-1640531527_i32 : i32
    %7 = vector.broadcast %6 : i32 to vector<8x128xi32>
    %8 = arith.addi %4, %7 : vector<8x128xi32>
    %c16_i32 = arith.constant 16 : i32
    %9 = vector.broadcast %c16_i32 : i32 to vector<8x128xi32>
    %10 = arith.shrui %8, %9 : vector<8x128xi32>
    %11 = arith.xori %8, %10 : vector<8x128xi32>
    %c2146121005_i32 = arith.constant 2146121005 : i32
    %12 = vector.broadcast %c2146121005_i32 : i32 to vector<8x128xi32>
    %13 = arith.muli %11, %12 : vector<8x128xi32>
    %c15_i32 = arith.constant 15 : i32
    %14 = vector.broadcast %c15_i32 : i32 to vector<8x128xi32>
    %15 = arith.shrui %13, %14 : vector<8x128xi32>
    %16 = arith.xori %13, %15 : vector<8x128xi32>
    %c-2073254261_i32 = arith.constant -2073254261 : i32
    %17 = vector.broadcast %c-2073254261_i32 : i32 to vector<8x128xi32>
    %18 = arith.muli %16, %17 : vector<8x128xi32>
    %c16_i32_0 = arith.constant 16 : i32
    %19 = vector.broadcast %c16_i32_0 : i32 to vector<8x128xi32>
    %20 = arith.shrui %18, %19 : vector<8x128xi32>
    %21 = arith.xori %18, %20 : vector<8x128xi32>
    %c16_i32_1 = arith.constant 16 : i32
    %22 = vector.broadcast %c16_i32_1 : i32 to vector<8x128xi32>
    %23 = arith.shrui %21, %22 : vector<8x128xi32>
    %c10_i32 = arith.constant 10 : i32
    %24 = vector.broadcast %c10_i32 : i32 to vector<8x128xi32>
    %25 = arith.muli %23, %24 : vector<8x128xi32>
    %c16_i32_2 = arith.constant 16 : i32
    %26 = vector.broadcast %c16_i32_2 : i32 to vector<8x128xi32>
    %27 = arith.shrui %25, %26 : vector<8x128xi32>
    %c0_3 = arith.constant 0 : index
    %c0_4 = arith.constant 0 : index
    %28 = vector.load %arg1[%c0_3, %c0_4] : memref<8x128xi32, #tpu.memory_space<vmem>>, vector<8x128xi32>
    tpu.vector_store %arg1[%c0_3, %c0_4], %27 {strides = array<i32>} : memref<8x128xi32, #tpu.memory_space<vmem>>, vector<8x128xi32>,
    return
  }
}

</mosaic_0001>

<bundles_post_ra>
// kernel: tpu_custom_call.1
= control target key start
LH: loop header
LB: loop body
LE: loop exit
PB: predicated region body
PF: predicated region fallthrough
CT: control target
= control target key end

     0   :  { %v10_v0 = vlaneseq  ;;  %s97_s0 = inlined_call_operand.<no memory space> [shape: s32[1], index: 0, kind: input, shape index: {}]   ;;  %s98_s1 = inlined_call_operand.hbm [shape: s32[8,128], index: 1, kind: output, shape index: {}]  }
   0x1   :  { %7 = vsyncpa [#allocation4], 0  ;;  %s17_s8 = smul.u32 2654435769, %s97_s0  ;;  %s71_s9 = smov [#allocation3]  }
   0x2   :  { %v11_v1 = vshrl.u32 %v10_v0, 7  ;;  %v13_v2 = vand.u32 127, %v10_v0  ;;  %s38_s10 = sshll.u32 %s71_s9, 4  ;;  %s39_s10 = int_to_ptr.vmem [resolvable:$true] %s38_s10 }
   0x3   :  { %v18_v4 = vstv %s17_s8  ;;  %s47_s0 = scalar_lea.vmem %s39_s10, 128  ;;  %p52_p1 = scmp.lt.s32.totalorder %s39_s10, %s39_s10 }
   0x4   :  { %v14_v3 = vmul.u32 128, %v11_v1  ;;  %p48_p0 = scmp.ne.s32.totalorder %s39_s10, %s47_s0  ;;  %p53_p2 = scmp.lt.s32.totalorder %s47_s0, %s47_s0 }
   0x6   :  { %v15_v5 = vadd.s32 %v14_v3, %v13_v2  ;;  %p54_p3 = por %p53_p2, %p52_p1 }
   0x8   :  { %v19_v6 = vadd.s32 %v18_v4, %v15_v5  ;;  %p55_p4 = pnand %p54_p3, %p48_p0 }
   0xa   :  { %v20_v7 = vshrl.u32 %v19_v6, 16 }
   0xc   :  { %v21_v8 = vxor.u32 %v20_v7, %v19_v6 }
   0xe   :  { %v22_v9 = vmul.u32 2146121005, %v21_v8 }
  0x10   :  { %v23_v10 = vshrl.u32 %v22_v9, 15 }
  0x12   :  { %v24_v11 = vxor.u32 %v23_v10, %v22_v9 }
  0x14   :  { %v25_v12 = vmul.u32 2221713035, %v24_v11 }
  0x16   :  { %v26_v13 = vshrl.u32 %v25_v12, 16 }
  0x18   :  { %v27_v14 = vxor.u32 %v26_v13, %v25_v12 }
  0x1a   :  { %v28_v15 = vshrl.u32 %v27_v14, 16 }
  0x1c   :  { %v29_v16 = vmul.u32 10, %v28_v15 }
  0x1e   :  { %v30_v17 = vshrl.u32 %v29_v16, 16 }
  0x20   :  { %31 = vst [vmem:[#allocation3] sm:$0xff] %v30_v17 }
  0x21   :  { %58 = shalt.err (!%p55_p4)
}
  0x22   :  { %s59_s13 = scalar_lea.hbm %s98_s1, 128 }
  0x23   :  { %p60_p5 = scmp.ne.s32.totalorder %s98_s1, %s59_s13  ;;  %p63_p6 = scmp.lt.u32.totalorder %s59_s13, %s98_s1 }
  0x25   :  { %p65_p7 = pnand %p63_p6, %p60_p5 }
  0x27   :  { %68 = shalt.err (!%p65_p7)
}
  0x28   :  { %41 = dma.vmem_to_hbm [thread:$0]  %s39_s10, 128, %s98_s1, [#allocation4]  }
  0x29   :  { %69 = dma.done.wait [#allocation4], 128  }
  0x2a   :  { %70 = vsyncadd [#allocation4], 4294967168 }
  0x2b   :  { %45 = vsyncpa [#allocation4], 1 }

</bundles_post_ra>
